<compile_context>
chip_gen: v5e
topology: v5e:2x2
jax: 0.10.0
libtpu: 0.0.40
codegen_flags: <defaults>
</compile_context>

<pallas_src>
import functools

import jax
import jax.numpy as jnp
from jax.experimental import pallas as pl
from jax.experimental.pallas import tpu as pltpu

LANE = 128
_MIB = 1024 * 1024


# --------------------------------------------------------------------------- #
# helpers
# --------------------------------------------------------------------------- #
def _round_up(x, m):
    return ((x + m - 1) // m) * m


def _pad2(a, rows, cols, dtype):
    out = jnp.zeros((rows, cols), dtype)
    return out.at[: a.shape[0], : a.shape[1]].set(a.astype(dtype))


@functools.lru_cache(maxsize=None)
def _vmem_capacity_bytes():
    """Per-core VMEM capacity; conservative fallback = v7x's 64 MiB."""
    try:
        return int(pltpu.get_tpu_info().vmem_capacity_bytes)
    except Exception:
        return 64 * _MIB


def _probe_pipeline_kernel(x_ref, c_ref, o_ref):
    o_ref[...] = x_ref[...] + c_ref[...]


@functools.lru_cache(maxsize=None)
def _pipeline_mode_supported():
    """Feature-probe BlockSpec(pipeline_mode=pl.Buffered(1)) once."""
    try:
        x = jnp.zeros((16, 128), jnp.float32)
        c = jnp.ones((8, 128), jnp.float32)
        out = pl.pallas_call(
            _probe_pipeline_kernel,
            out_shape=jax.ShapeDtypeStruct((16, 128), jnp.float32),
            grid=(2,),
            in_specs=[
                pl.BlockSpec((8, 128), lambda i: (i, 0)),
                pl.BlockSpec((8, 128), lambda i: (0, 0),
                             pipeline_mode=pl.Buffered(1)),
            ],
            out_specs=pl.BlockSpec((8, 128), lambda i: (i, 0)),
        )(x, c)
        jax.block_until_ready(out)
        return True
    except Exception:
        return False


def _const_spec(block_shape, index_map):
    """BlockSpec for a grid-invariant operand; single-buffered when supported
    (double-buffering a block that never changes is pure VMEM waste)."""
    if _pipeline_mode_supported():
        return pl.BlockSpec(block_shape, index_map,
                            pipeline_mode=pl.Buffered(1))
    return pl.BlockSpec(block_shape, index_map)


def _choose_tiles(n, max_tile=1024):
    """Pick (n_pad, tm, tk) for the aggregation passes.

    - tk (contraction tile over A_hat columns) is as large as possible (up to
      max_tile) so the HBM-bound A_hat stream runs near the DMA roofline.
    - N is padded up to a multiple of tk: a few extra zero rows of A are far
      cheaper than falling back to 128-wide tiles for awkward N.
    - tm (row tile) matches tk, but is halved if that would leave a single row
      block, so megacore / v7x's two TensorCores both get work.
    """
    n128 = _round_up(max(n, 1), LANE)
    tk = min(max_tile, n128)          # multiple of 128
    n_pad = _round_up(n128, tk)
    tm = tk
    if n_pad // tm < 2 and tm > LANE:
        tm //= 2                      # still a multiple of 64 (>= 8), divides n_pad
    return n_pad, tm, tk


# --------------------------------------------------------------------------- #
# kernels
# --------------------------------------------------------------------------- #
def _pre_mp_kernel(x_ref, w_pre_ref, b_pre_ref, w_mp1_ref, out_ref):
    """pre_mp (Linear + ReLU) fused with the first GCN layer's weight transform.

    Emits messages_1 = relu(X @ W_pre + b_pre) @ W_mp1  (bf16 output), so the
    aggregation pass only has to stream A_hat and the [N, C] messages.
    """
    h = jnp.dot(x_ref[...], w_pre_ref[...], preferred_element_type=jnp.float32)
    h = jnp.maximum(h + b_pre_ref[...], 0.0)
    hw = jnp.dot(h.astype(w_mp1_ref.dtype), w_mp1_ref[...],
                 preferred_element_type=jnp.float32)
    out_ref[...] = hw.astype(out_ref.dtype)


def _gcn_agg_kernel(a_ref, m_ref, b_in_ref, w_next_ref, b_next_ref,
                    out_ref, acc_ref, *, tk, messages_resident):
    """One GCN aggregation pass, tiled over (row block i, contraction block k):

        acc[i]  = sum_k A_hat[i, k] @ messages[k]           (bf16 MXU, f32 acc)
        out[i]  = (relu(acc[i] + b_in) @ W_next) + b_next    (fused finalize)

    If messages_resident, m_ref holds the full [n_pad, c_msg] messages array in
    VMEM and the k-th slab is sliced in-kernel (no HBM re-read per row block).
    """
    k = pl.program_id(1)

    if messages_resident:
        start = pl.multiple_of(k * tk, tk)
        m = m_ref[pl.ds(start, tk), :]
    else:
        m = m_ref[...]

    part = jnp.dot(a_ref[...], m, preferred_element_type=jnp.float32)

    @pl.when(k == 0)
    def _first():                      # direct store: no zero-init + add
        acc_ref[...] = part

    @pl.when(k != 0)
    def _accumulate():
        acc_ref[...] = acc_ref[...] + part

    @pl.when(k == pl.num_programs(1) - 1)
    def _finalize():
        h = jnp.maximum(acc_ref[...] + b_in_ref[...], 0.0)
        out = jnp.dot(h.astype(w_next_ref.dtype), w_next_ref[...],
                      preferred_element_type=jnp.float32) + b_next_ref[...]
        out_ref[...] = out.astype(out_ref.dtype)


# --------------------------------------------------------------------------- #
# pallas_call wrappers
# --------------------------------------------------------------------------- #
def _call_pre_mp(x_p, w_pre, b_pre, w_mp1, tm):
    n_pad, cin = x_p.shape
    ch = w_pre.shape[1]
    cp = w_mp1.shape[1]
    cap = _vmem_capacity_bytes()
    nbuf = 1 if _pipeline_mode_supported() else 2
    est = (2 * tm * cin * 2 + 2 * tm * cp * 2
           + nbuf * (cin * ch * 2 + ch * 4 + ch * cp * 2))
    vmem_limit = int(min(max(est + 4 * _MIB, 16 * _MIB), int(0.85 * cap)))
    flops = 2 * n_pad * cin * ch + 2 * n_pad * ch * cp
    bytes_accessed = (n_pad * cin * 2 + n_pad * cp * 2
                      + cin * ch * 2 + ch * cp * 2)
    return pl.pallas_call(
        _pre_mp_kernel,
        out_shape=jax.ShapeDtypeStruct((n_pad, cp), jnp.bfloat16),
        grid_spec=pltpu.PrefetchScalarGridSpec(
            num_scalar_prefetch=0,
            grid=(n_pad // tm,),
            in_specs=[
                pl.BlockSpec((tm, cin), lambda i: (i, 0)),
                _const_spec((cin, ch), lambda i: (0, 0)),
                _const_spec((1, ch), lambda i: (0, 0)),
                _const_spec((ch, cp), lambda i: (0, 0)),
            ],
            out_specs=pl.BlockSpec((tm, cp), lambda i: (i, 0)),
        ),
        compiler_params=pltpu.CompilerParams(
            dimension_semantics=("parallel",),
            vmem_limit_bytes=vmem_limit,
        ),
        cost_estimate=pl.CostEstimate(flops=flops, transcendentals=0,
                                      bytes_accessed=bytes_accessed),
    )(x_p, w_pre, b_pre, w_mp1)


def _call_gcn_agg(a_p, msgs, b_in, w_next, b_next, out_dtype, tm, tk,
                  messages_resident=None):
    n_pad = a_p.shape[0]
    c_msg = msgs.shape[1]
    c_out = w_next.shape[1]
    out_isz = jnp.dtype(out_dtype).itemsize
    cap = _vmem_capacity_bytes()
    one_buf = _pipeline_mode_supported()
    msg_buffers = 1 if one_buf else 2
    const_buffers = 1 if one_buf else 2

    def vmem_estimate(resident):
        a_bytes = 2 * tm * tk * 2                               # A tile, 2-buf
        m_bytes = (msg_buffers * n_pad * c_msg * 2 if resident
                   else 2 * tk * c_msg * 2)                     # messages
        o_bytes = 2 * tm * c_out * out_isz                      # out tile
        acc_bytes = tm * c_msg * 4                              # f32 accumulator
        const_bytes = const_buffers * (c_msg * c_out * 2
                                       + (c_msg + c_out) * 4)   # bias + W_next
        return a_bytes + m_bytes + o_bytes + acc_bytes + const_bytes

    if messages_resident is None:
        # Keep messages resident in VMEM (kills the per-row-block HBM re-read)
        # when the full plan fits comfortably under the per-core capacity
        # (64 MiB on v7x, 128 MiB on v5e/v6e), with headroom for Mosaic scratch.
        messages_resident = vmem_estimate(True) + 8 * _MIB <= int(0.7 * cap)

    est = vmem_estimate(messages_resident)
    vmem_limit = int(min(max(est + 4 * _MIB, 16 * _MIB), int(0.85 * cap)))

    if messages_resident:
        msg_spec = _const_spec((n_pad, c_msg), lambda i, k: (0, 0))
    else:
        msg_spec = pl.BlockSpec((tk, c_msg), lambda i, k: (k, 0))
    kernel = functools.partial(_gcn_agg_kernel, tk=tk,
                               messages_resident=messages_resident)

    msg_passes = 1 if messages_resident else (n_pad // tm)
    flops = 2 * n_pad * n_pad * c_msg + 2 * n_pad * c_msg * c_out
    bytes_accessed = (n_pad * n_pad * 2                 # A_hat stream (bf16)
                      + msg_passes * n_pad * c_msg * 2  # messages
                      + n_pad * c_out * out_isz         # output
                      + c_msg * c_out * 2)              # W_next

    return pl.pallas_call(
        kernel,
        out_shape=jax.ShapeDtypeStruct((n_pad, c_out), out_dtype),
        grid_spec=pltpu.PrefetchScalarGridSpec(
            num_scalar_prefetch=0,
            grid=(n_pad // tm, n_pad // tk),
            in_specs=[
                pl.BlockSpec((tm, tk), lambda i, k: (i, k)),        # A_hat tile
                msg_spec,                                           # messages
                _const_spec((1, c_msg), lambda i, k: (0, 0)),       # layer bias
                _const_spec((c_msg, c_out), lambda i, k: (0, 0)),   # next weight
                _const_spec((1, c_out), lambda i, k: (0, 0)),       # next bias
            ],
            out_specs=pl.BlockSpec((tm, c_out), lambda i, k: (i, 0)),
            scratch_shapes=[pltpu.VMEM((tm, c_msg), jnp.float32)],
        ),
        compiler_params=pltpu.CompilerParams(
            dimension_semantics=("parallel", "arbitrary"),
            vmem_limit_bytes=vmem_limit,
        ),
        cost_estimate=pl.CostEstimate(flops=flops, transcendentals=0,
                                      bytes_accessed=bytes_accessed),
    )(a_p, msgs, b_in, w_next, b_next)


def gnn_forward_pallas(x, a_hat, params, *, max_tile=1024,
                       messages_resident=None):
    n, dim_in = x.shape
    dim_inner = params["w_pre"].shape[1]
    dim_out = params["w_head"].shape[1]

    cin = _round_up(dim_in, LANE)
    cp = _round_up(dim_inner, LANE)
    co = _round_up(dim_out, LANE)
    n_pad, tm, tk = _choose_tiles(n, max_tile)

    # Zero-pad to lane-dense / tile-dense shapes; MXU operands shipped as bf16
    # (f32 accumulation).  INVARIANT: padded rows/columns of A_hat are exactly
    # zero.  Padded node rows produce relu(bias) != 0 messages, but the zero
    # padded columns of A_hat null their contribution to real rows, and the
    # final [:n, :dim_out] slice drops the padded output rows.
    x_p = _pad2(x, n_pad, cin, jnp.bfloat16)
    a_p = _pad2(a_hat, n_pad, n_pad, jnp.bfloat16)

    w_pre = _pad2(params["w_pre"], cin, cp, jnp.bfloat16)
    b_pre = _pad2(params["b_pre"], 1, cp, jnp.float32)
    w_mp1 = _pad2(params["w_mp1"], cp, cp, jnp.bfloat16)
    b_mp1 = _pad2(params["b_mp1"], 1, cp, jnp.float32)
    w_mp2 = _pad2(params["w_mp2"], cp, cp, jnp.bfloat16)
    b_mp2 = _pad2(params["b_mp2"], 1, cp, jnp.float32)
    w_head = _pad2(params["w_head"], cp, co, jnp.bfloat16)
    b_head = _pad2(params["b_head"], 1, co, jnp.float32)
    zero_bias_cp = jnp.zeros((1, cp), jnp.float32)

    # pre_mp + first GCN weight: m1 = relu(X Wpre + bpre) @ Wmp1
    m1 = _call_pre_mp(x_p, w_pre, b_pre, w_mp1, tm)
    # GCN layer 1 aggregation, fused with layer-2 weight: m2 = relu(A m1 + b1) @ Wmp2
    m2 = _call_gcn_agg(a_p, m1, b_mp1, w_mp2, zero_bias_cp, jnp.bfloat16,
                       tm, tk, messages_resident)
    # GCN layer 2 aggregation, fused with the head: out = relu(A m2 + b2) @ Whead + bhead
    out_p = _call_gcn_agg(a_p, m2, b_mp2, w_head, b_head, jnp.float32,
                          tm, tk, messages_resident)

    return out_p[:n, :dim_out]


# --------------------------------------------------------------------------- #
# references
# --------------------------------------------------------------------------- #
def gnn_forward_ref(x, a_hat, p):
    h = jnp.maximum(x @ p["w_pre"] + p["b_pre"], 0.0)
    h = jnp.maximum(a_hat @ (h @ p["w_mp1"]) + p["b_mp1"], 0.0)
    h = jnp.maximum(a_hat @ (h @ p["w_mp2"]) + p["b_mp2"], 0.0)
    return h @ p["w_head"] + p["b_head"]


def gnn_forward_ref_mixed(x, a_hat, p):
    """Same math with the kernel's bf16-operand / f32-accumulate casting."""
    bf = jnp.bfloat16

    def mm(a, b):
        return jnp.dot(a.astype(bf), b.astype(bf),
                       preferred_element_type=jnp.float32)

    h = jnp.maximum(mm(x, p["w_pre"]) + p["b_pre"], 0.0)
    m1 = mm(h, p["w_mp1"]).astype(bf)
    h1 = jnp.maximum(mm(a_hat, m1) + p["b_mp1"], 0.0)
    m2 = mm(h1, p["w_mp2"]).astype(bf)
    h2 = jnp.maximum(mm(a_hat, m2) + p["b_mp2"], 0.0)
    return mm(h2, p["w_head"]) + p["b_head"]


# --------------------------------------------------------------------------- #
# deterministic inputs
# --------------------------------------------------------------------------- #
def make_params(key, dim_in, dim_inner, dim_out):
    ks = jax.random.split(key, 4)

    def glorot(k, fan_in, fan_out):
        scale = jnp.sqrt(2.0 / (fan_in + fan_out))
        return scale * jax.random.normal(k, (fan_in, fan_out), dtype=jnp.float32)

    return {
        "w_pre": glorot(ks[0], dim_in, dim_inner),
        "b_pre": jnp.zeros((1, dim_inner), jnp.float32),
        "w_mp1": glorot(ks[1], dim_inner, dim_inner),
        "b_mp1": jnp.zeros((1, dim_inner), jnp.float32),
        "w_mp2": glorot(ks[2], dim_inner, dim_inner),
        "b_mp2": jnp.zeros((1, dim_inner), jnp.float32),
        "w_head": glorot(ks[3], dim_inner, dim_out),
        "b_head": jnp.zeros((1, dim_out), jnp.float32),
    }


def make_graph(key, n):
    """Deterministic random graph -> dense symmetrically normalized adjacency."""
    logits = jax.random.uniform(key, (n, n))
    adj = (logits > 0.7).astype(jnp.float32)
    adj = jnp.maximum(adj, adj.T)                       # symmetrize
    adj = adj + jnp.eye(n, dtype=jnp.float32)           # self-loops
    deg = jnp.sum(adj, axis=1)
    d_inv_sqrt = 1.0 / jnp.sqrt(deg)
    return adj * d_inv_sqrt[:, None] * d_inv_sqrt[None, :]


if __name__ == "__main__":
    root = jax.random.PRNGKey(0)

    def run_case(n, dim_in, dim_inner, dim_out, **kwargs):
        k_x, k_g, k_p = jax.random.split(jax.random.fold_in(root, n), 3)
        x = jax.random.normal(k_x, (n, dim_in), dtype=jnp.float32)
        a_hat = make_graph(k_g, n)
        params = make_params(k_p, dim_in, dim_inner, dim_out)

        out = jax.block_until_ready(
            gnn_forward_pallas(x, a_hat, params, **kwargs))
        assert out.shape == (n, dim_out), out.shape

        ref_mixed = gnn_forward_ref_mixed(x, a_hat, params)
        ref_f32 = gnn_forward_ref(x, a_hat, params)
        assert jnp.allclose(out, ref_mixed, atol=1e-2, rtol=1e-2), \
            f"mismatch vs bf16-mimicking JAX reference (N={n})"
        assert jnp.allclose(out, ref_f32, atol=5e-2, rtol=1e-1), \
            f"mismatch vs f32 JAX reference (N={n})"

    # Small single-block sanity case.
    run_case(16, 8, 32, 4)
    # Multi row-block / multi reduction-block case (grid 3x3): exercises the
    # pl.when first-store/accumulate/finalize path and the parallel row axis,
    # with the messages operand resident in VMEM (auto).
    run_case(300, 16, 128, 8, max_tile=128)
    # Same graph through the streamed-messages fallback path.
    run_case(300, 16, 128, 8, max_tile=128, messages_resident=False)

    print("KERNEL_OK")
</pallas_src>

<mosaic_0001>
module attributes {stable_mosaic.version = 11 : i64} {
  func.func @_probe_pipeline_kernel(%arg0: i32, %arg1: memref<8x128xf32, #tpu.memory_space<vmem>>, %arg2: memref<8x128xf32, #tpu.memory_space<vmem>>, %arg3: memref<8x128xf32, #tpu.memory_space<vmem>>) attributes {dimension_semantics = [#tpu.dimension_semantics<arbitrary>], iteration_bounds = array<i64: 2>, scalar_prefetch = 0 : i64, scratch_operands = 0 : i64, tpu.core_type = #tpu.core_type<tc>, window_params = [{transform_indices = @transform_0, window_bounds = array<i64: 8, 128>}, {pipeline_mode = #tpu.pipeline_mode<synchronous>, transform_indices = @transform_1, window_bounds = array<i64: 8, 128>}, {transform_indices = @transform_2, window_bounds = array<i64: 8, 128>}]} {
    %c0 = arith.constant 0 : index
    %c0_0 = arith.constant 0 : index
    %0 = vector.load %arg1[%c0, %c0_0] : memref<8x128xf32, #tpu.memory_space<vmem>>, vector<8x128xf32>
    %c0_1 = arith.constant 0 : index
    %c0_2 = arith.constant 0 : index
    %1 = vector.load %arg2[%c0_1, %c0_2] : memref<8x128xf32, #tpu.memory_space<vmem>>, vector<8x128xf32>
    %2 = arith.addf %0, %1 : vector<8x128xf32>
    %c0_3 = arith.constant 0 : index
    %c0_4 = arith.constant 0 : index
    %3 = vector.load %arg3[%c0_3, %c0_4] : memref<8x128xf32, #tpu.memory_space<vmem>>, vector<8x128xf32>
    tpu.vector_store %arg3[%c0_3, %c0_4], %2 {strides = array<i32>} : memref<8x128xf32, #tpu.memory_space<vmem>>, vector<8x128xf32>,
    return
  }
  func.func @transform_0(%arg0: i32) -> (i32, i32) {
    %c0_i32 = arith.constant 0 : i32
    %c0_i32_0 = arith.constant 0 : i32
    return %arg0, %c0_i32 : i32, i32
  }
  func.func @transform_1(%arg0: i32) -> (i32, i32) {
    %c0_i32 = arith.constant 0 : i32
    %c0_i32_0 = arith.constant 0 : i32
    %c0_i32_1 = arith.constant 0 : i32
    return %c0_i32, %c0_i32_0 : i32, i32
  }
  func.func @transform_2(%arg0: i32) -> (i32, i32) {
    %c0_i32 = arith.constant 0 : i32
    %c0_i32_0 = arith.constant 0 : i32
    return %arg0, %c0_i32 : i32, i32
  }
}

module attributes {stable_mosaic.version = 11 : i64} {
  func.func @_pre_mp_kernel(%arg0: i32, %arg1: memref<128x128xbf16, #tpu.memory_space<vmem>>, %arg2: memref<128x128xbf16, #tpu.memory_space<vmem>>, %arg3: memref<1x128xf32, #tpu.memory_space<vmem>>, %arg4: memref<128x128xbf16, #tpu.memory_space<vmem>>, %arg5: memref<128x128xbf16, #tpu.memory_space<vmem>>) attributes {dimension_semantics = [#tpu.dimension_semantics<parallel>], iteration_bounds = array<i64: 1>, scalar_prefetch = 0 : i64, scratch_operands = 0 : i64, tpu.core_type = #tpu.core_type<tc>, window_params = [{transform_indices = @transform_0, window_bounds = array<i64: 128, 128>}, {pipeline_mode = #tpu.pipeline_mode<synchronous>, transform_indices = @transform_1, window_bounds = array<i64: 128, 128>}, {pipeline_mode = #tpu.pipeline_mode<synchronous>, transform_indices = @transform_2, window_bounds = array<i64: 1, 128>}, {pipeline_mode = #tpu.pipeline_mode<synchronous>, transform_indices = @transform_3, window_bounds = array<i64: 128, 128>}, {transform_indices = @transform_4, window_bounds = array<i64: 128, 128>}]} {
    %c0 = arith.constant 0 : index
    %c0_0 = arith.constant 0 : index
    %0 = vector.load %arg1[%c0, %c0_0] : memref<128x128xbf16, #tpu.memory_space<vmem>>, vector<128x128xbf16>
    %c0_1 = arith.constant 0 : index
    %c0_2 = arith.constant 0 : index
    %1 = vector.load %arg2[%c0_1, %c0_2] : memref<128x128xbf16, #tpu.memory_space<vmem>>, vector<128x128xbf16>
    %cst = arith.constant dense<0.000000e+00> : vector<128x128xf32>
    %2 = tpu.matmul %0, %1, %cst {dimension_numbers = #tpu.dot_dimension_numbers<[1], [0], [0], [1], [0, 0, 1, 1], [], []>} : vector<128x128xbf16>, vector<128x128xbf16>, vector<128x128xf32> -> vector<128x128xf32>
    %c0_3 = arith.constant 0 : index
    %c0_4 = arith.constant 0 : index
    %3 = vector.load %arg3[%c0_3, %c0_4] : memref<1x128xf32, #tpu.memory_space<vmem>>, vector<1x128xf32>
    %4 = vector.broadcast %3 : vector<1x128xf32> to vector<128x128xf32>
    %5 = arith.addf %2, %4 : vector<128x128xf32>
    %cst_5 = arith.constant 0.000000e+00 : f32
    %6 = vector.broadcast %cst_5 : f32 to vector<128x128xf32>
    %7 = arith.maximumf %5, %6 : vector<128x128xf32>
    %8 = arith.truncf %7 : vector<128x128xf32> to vector<128x128xbf16>
    %c0_6 = arith.constant 0 : index
    %c0_7 = arith.constant 0 : index
    %9 = vector.load %arg4[%c0_6, %c0_7] : memref<128x128xbf16, #tpu.memory_space<vmem>>, vector<128x128xbf16>
    %cst_8 = arith.constant dense<0.000000e+00> : vector<128x128xf32>
    %10 = tpu.matmul %8, %9, %cst_8 {dimension_numbers = #tpu.dot_dimension_numbers<[1], [0], [0], [1], [0, 0, 1, 1], [], []>} : vector<128x128xbf16>, vector<128x128xbf16>, vector<128x128xf32> -> vector<128x128xf32>
    %11 = arith.truncf %10 : vector<128x128xf32> to vector<128x128xbf16>
    %c0_9 = arith.constant 0 : index
    %c0_10 = arith.constant 0 : index
    %12 = vector.load %arg5[%c0_9, %c0_10] : memref<128x128xbf16, #tpu.memory_space<vmem>>, vector<128x128xbf16>
    tpu.vector_store %arg5[%c0_9, %c0_10], %11 {strides = array<i32>} : memref<128x128xbf16, #tpu.memory_space<vmem>>, vector<128x128xbf16>,
    return
  }
  func.func @transform_0(%arg0: i32) -> (i32, i32) {
    %c0_i32 = arith.constant 0 : i32
    %c0_i32_0 = arith.constant 0 : i32
    return %arg0, %c0_i32 : i32, i32
  }
  func.func @transform_1(%arg0: i32) -> (i32, i32) {
    %c0_i32 = arith.constant 0 : i32
    %c0_i32_0 = arith.constant 0 : i32
    %c0_i32_1 = arith.constant 0 : i32
    return %c0_i32, %c0_i32_0 : i32, i32
  }
  func.func @transform_2(%arg0: i32) -> (i32, i32) {
    %c0_i32 = arith.constant 0 : i32
    %c0_i32_0 = arith.constant 0 : i32
    %c0_i32_1 = arith.constant 0 : i32
    return %c0_i32, %c0_i32_0 : i32, i32
  }
  func.func @transform_3(%arg0: i32) -> (i32, i32) {
    %c0_i32 = arith.constant 0 : i32
    %c0_i32_0 = arith.constant 0 : i32
    %c0_i32_1 = arith.constant 0 : i32
    return %c0_i32, %c0_i32_0 : i32, i32
  }
  func.func @transform_4(%arg0: i32) -> (i32, i32) {
    %c0_i32 = arith.constant 0 : i32
    %c0_i32_0 = arith.constant 0 : i32
    return %arg0, %c0_i32 : i32, i32
  }
}

</mosaic_0001>

<bundles_post_ra>
// kernel: tpu_custom_call.1
= control target key start
LH: loop header
LB: loop body
LE: loop exit
PB: predicated region body
PF: predicated region fallthrough
CT: control target
= control target key end

     0   :  { %7 = vsyncpa [#allocation3], 0  ;;  %s633_s0 = inlined_call_operand.hbm [shape: f32[16,128], index: 0, kind: input, shape index: {}]   ;;  %s634_s1 = inlined_call_operand.hbm [shape: f32[8,128], index: 1, kind: input, shape index: {}]   ;;  %s635_s2 = inlined_call_operand.hbm [shape: f32[16,128], index: 2, kind: output, shape index: {}]  }
   0x1   :  { %9 = vsyncpa [#allocation3 + $0x1], 0 }
   0x2   :  { %10 = vsyncpa [#allocation6], 0 }
   0x3   :  { %11 = vsyncpa [#allocation4], 0 }
   0x4   :  { %13 = vsyncpa [#allocation4 + $0x1], 0  ;;  %s495_s9 = smov 0   ;;  %s497_s10 = smov 0  }
   0x5   :  { %s499_s11 = smov 0   ;;  %s501_s12 = smov 0  }
   0x6 LB: > { %s516_s13 = sadd.s32 4294967295, %s477_s12   ;;  %s276_s14 = sadd.s32 4294967294, %s477_s12   ;;  %s477_s12 = sphi %s501_s12, %s645_s12   ;;  %s473_s11 = sphi %s499_s11, %s644_s11   ;;  %s469_s10 = sphi %s497_s10, %s643_s10   ;;  %s465_s9 = sphi %s495_s9, %s642_s9  }
   0x7   : > { %p39_p0 = scmp.ne.s32.totalorder %s469_s10, %s465_s9  ;;  %p40_p1 = scmp.eq.s32.totalorder %s516_s13, 0 }
   0x8   : > { %p84_p2 = scmp.eq.s32.totalorder %s516_s13, 1  ;;  %p90_p3 = scmp.eq.s32.totalorder %s276_s14, 1 }
   0x9   : > { %p525_p4 = por %p40_p1, %p39_p0  ;;  %p277_p5 = scmp.ge.s32.totalorder %s477_s12, 1 }
   0xa   : > { %p530_p6 = por %p90_p3, %p39_p0  ;;  %p97_p7 = scmp.lt.s32.totalorder %s477_s12, 3 }
   0xb   : > { %s109_s19 = sshll.u32 %s634_s1, 4  ;;  %s479_s21 = smov [#allocation5]   ;;  %s110_s19 = int_to_ptr.hbm [resolvable:$true] %s109_s19 }
   0xc   : > { %p538_p8 = pnand %p277_p5, %p97_p7  ;;  %s111_s22 = sshll.u32 %s479_s21, 4  ;;  %s112_s22 = int_to_ptr.vmem [resolvable:$true] %s111_s22 }
   0xd   : > { %s548_s23 = sadd.s32 1, %s477_s12   ;;  %s26_s24 = sadd.s32 1, %s473_s11 }
   0xe   : > { %p298_p10 = pneg %p538_p8  ;;  %s23_s25 = ssub.s32 %s477_s12, %s548_s23 }
   0xf   : > { %p24_p12 = scmp.eq.s32.totalorder %s23_s25, 0  ;;  %p33_p13 = scmp.ne.s32.totalorder %s473_s11, %s469_s10 }
  0x10   : > { %p299_p11 = pnand %p298_p10, %p40_p1  ;;  %p34_p0 = scmp.eq.s32.totalorder %s477_s12, 0 }
  0x11   : > { %s557_s26 = scalar_select %p24_p12, %s473_s11, %s26_s24  }
  0x12   : > { %301 = dma.hbm_to_vmem [thread:$0]  (!%p299_p11), %s110_s19, 128, %s112_s22, [#allocation6]  }
  0x13   : > { %p561_p3 = por %p84_p2, %p33_p13  ;;  %p311_p5 = scmp.lt.s32.totalorder %s477_s12, 2 }
  0x14   : > { %s122_s28 = sand.u32 1, %s473_s11   ;;  %s281_s29 = sshll.u32 %s477_s12, 3 }
  0x15   : > { %p35_p7 = por %p34_p0, %p33_p13  ;;  %s280_s30 = sshll.u32 %s122_s28, 3 }
  0x16   : > { %s130_s5 = scalar_lea.hbm %s633_s0, %s281_s29  ;;  %s126_s7 = scalar_lea.vmem [#allocation2], %s280_s30 }
  0x17   : > { %s132_s6 = sshll.u32 %s130_s5, 4  ;;  %s134_s8 = sshll.u32 %s126_s7, 4  ;;  %s133_s6 = int_to_ptr.hbm [resolvable:$true] %s132_s6  ;;  %s135_s8 = int_to_ptr.vmem [resolvable:$true] %s134_s8 }
  0x18   : > { %p571_p10 = pnand %p311_p5, %p35_p7  ;;  %s123_s17 = scalar_lea.sflag [#allocation3], %s122_s28 }
  0x19   : > { %s377_s18 = sshra.s32 %s133_s6, 4  ;;  %s384_s24 = scalar_lea.hbm %s633_s0, 16  ;;  %s378_s18 = int_to_ptr.hbm [resolvable:$true] %s377_s18 }
  0x1a   : > { %s379_s19 = scalar_lea.hbm %s378_s18, 8  ;;  %p381_p11 = pneg %p571_p10 }
  0x1b   : > { %p380_p2 = scmp.ne.s32.totalorder %s378_s18, %s379_s19  ;;  %p385_p0 = scmp.lt.s32.totalorder %s378_s18, %s633_s0 }
  0x1c   : > { %p386_p5 = scmp.lt.s32.totalorder %s384_s24, %s379_s19 }
  0x1d   : > { %p382_p12 = pnand %p381_p11, %p380_p2 }
  0x1e   : > { %p387_p7 = por %p386_p5, %p385_p0 }
  0x1f   : > { %p383_p13 = pneg %p382_p12 }
  0x21   : > { %p388_p9 = pnand %p387_p7, %p383_p13 }
  0x23   : > { %391 = shalt.err (!%p388_p9)
}
  0x24   : > { %305 = dma.hbm_to_vmem [thread:$0]  (!%p571_p10), %s133_s6, 128, %s135_s8, %s123_s17  }
  0x25   : > { %143 = sbr.rel (%p538_p8) target bundleno = 60 (0x3c), region = 28  ;;  %s588_s28 = sand.u32 (!%p538_p8), 1, %s469_s10  }
  0x26   : > { %s283_s30 = sshll.u32 (!%p538_p8), %s588_s28, 3  ;;  %s146_s3 = scalar_lea.sflag (!%p538_p8), [#allocation3], %s588_s28 }
  0x27   : > { %s149_s4 = scalar_lea.vmem (!%p538_p8), [#allocation2], %s283_s30 }
  0x2a   : > { %452 = dma.done.wait (%p525_p4), %s146_s3, 128  }
  0x2b   : > { %454 = vsyncadd (%p525_p4), %s146_s3, 4294967168 }
  0x2c   : > { %456 = dma.done.wait (%p40_p1), [#allocation6], 128  }
  0x2d   : > { %458 = vsyncadd (%p40_p1), [#allocation6], 4294967168  ;;  %s287_s20 = sshll.u32 %s516_s13, 3  ;;  %s175_s8 = scalar_lea.vmem [#allocation7], %s283_s30  ;;  %v176_v0 = vld [vmem:[%s149_s4] sm:$0xff]  ;;  %v177_v1 = vld [vmem:[#allocation5] sm:$0xff] }
  0x2e   : > { %s191_s7 = scalar_lea.hbm %s635_s2, %s287_s20  ;;  %s193_s14 = sshll.u32 %s175_s8, 4  ;;  %v178_v2 = vadd.f32 %v177_v1, %v176_v0  ;;  %s194_s14 = int_to_ptr.vmem [resolvable:$true] %s193_s14 }
  0x2f   : > { %s195_s17 = sshll.u32 %s191_s7, 4  ;;  %s181_s15 = scalar_lea.sflag [#allocation4], %s588_s28  ;;  %s196_s17 = int_to_ptr.hbm [resolvable:$true] %s195_s17 }
  0x30   : > { %179 = vst [vmem:[%s175_s8] sm:$0xff] %v178_v2  ;;  %s421_s18 = sshra.s32 %s196_s17, 4  ;;  %s427_s22 = scalar_lea.hbm %s635_s2, 16  ;;  %s422_s18 = int_to_ptr.hbm [resolvable:$true] %s421_s18 }
  0x31   : > { %s423_s19 = scalar_lea.hbm %s422_s18, 8  ;;  %p428_p9 = scmp.lt.s32.totalorder %s422_s18, %s635_s2 }
  0x32   : > { %p424_p1 = scmp.ne.s32.totalorder %s422_s18, %s423_s19  ;;  %p429_p10 = scmp.lt.s32.totalorder %s427_s22, %s423_s19 }
  0x34   : > { %p425_p4 = pnand %p424_p1, %p561_p3  ;;  %p430_p2 = por %p429_p10, %p428_p9 }
  0x36   : > { %p426_p8 = pneg %p425_p4 }
  0x38   : > { %p431_p11 = pnand %p430_p2, %p426_p8 }
  0x3a   : > { %434 = shalt.err (!%p431_p11)
}
  0x3b   : > { %296 = dma.vmem_to_hbm [thread:$0]  (%p561_p3), %s194_s14, 128, %s196_s17, %s181_s15  }
  0x3c PF: > { %s207_s29 = sand.u32 1, %s465_s9   ;;  %p641_p12 = scmp.ge.s32.totalorder %s477_s12, 2 }
  0x3d   : > { %s208_s28 = scalar_lea.sflag [#allocation4], %s207_s29 }
  0x3e   : > { %p307_p13 = pnand %p641_p12, %p530_p6 }
  0x40   : > { %p308_p0 = pneg %p307_p13 }
  0x42   : > { %460 = dma.done.wait (%p308_p0), %s208_s28, 128  }
  0x43   : > { %462 = vsyncadd (%p308_p0), %s208_s28, 4294967168  ;;  %p16_p5 = scmp.ge.s32.totalorder %s548_s23, 4   ;;  %s642_s9 = smov %s469_s10 }
  0x44   : > { %s643_s10 = smov %s473_s11  ;;  %s644_s11 = smov %s557_s26 }
  0x45   : > { %s645_s12 = smov %s548_s23  ;;  %18 = sbr.rel (!%p16_p5) target bundleno = 6 (0x6), region = 77 }
  0x4a   :  { %214 = vsyncpa [#allocation3], 1 }
  0x4b   :  { %216 = vsyncpa [#allocation3 + $0x1], 1 }
  0x4c   :  { %217 = vsyncpa [#allocation6], 1 }
  0x4d   :  { %218 = vsyncpa [#allocation4], 1 }
  0x4e   :  { %220 = vsyncpa [#allocation4 + $0x1], 1 }

// kernel: tpu_custom_call.1
= control target key start
LH: loop header
LB: loop body
LE: loop exit
PB: predicated region body
PF: predicated region fallthrough
CT: control target
= control target key end

     0   :  { %9 = vsyncpa [#allocation3], 0  ;;  %s785_s0 = inlined_call_operand.hbm [shape: bf16[128,128], index: 0, kind: input, shape index: {}]   ;;  %s786_s1 = inlined_call_operand.hbm [shape: bf16[128,128], index: 1, kind: input, shape index: {}]   ;;  %s787_s2 = inlined_call_operand.vmem [shape: f32[1,128], index: 2, kind: input, shape index: {}]   ;;  %s788_s3 = inlined_call_operand.hbm [shape: bf16[128,128], index: 3, kind: input, shape index: {}]   ;;  %s789_s4 = inlined_call_operand.hbm [shape: bf16[128,128], index: 4, kind: output, shape index: {}]  }
   0x1   :  { %10 = vsyncpa [#allocation6], 0 }
   0x2   :  { %11 = vsyncpa [#allocation4], 0  ;;  %s29_s17 = sshll.u32 %s786_s1, 4  ;;  %s727_s18 = smov [#allocation5]   ;;  %s30_s17 = int_to_ptr.hbm [resolvable:$true] %s29_s17 }
   0x3   :  { %s31_s19 = sshll.u32 %s727_s18, 4  ;;  %s16_s22 = sshll.u32 %s785_s0, 4  ;;  %s32_s19 = int_to_ptr.vmem [resolvable:$true] %s31_s19  ;;  %s17_s22 = int_to_ptr.hbm [resolvable:$true] %s16_s22 }
   0x4   :  { %s728_s23 = smov 64   ;;  %s729_s24 = smov 4  }
   0x5   :  { %37 = dma.hbm_to_vmem [thread:$0]  %s30_s17, 1024, %s32_s19, [#allocation6], %s728_s23, %s728_s23, %s729_s24  }
   0x6   :  { %s730_s25 = smov [#allocation2]   ;;  %s44_s1 = sshll.u32 %s788_s3, 4  ;;  %s45_s1 = int_to_ptr.hbm [resolvable:$true] %s44_s1 }
   0x7   :  { %s18_s26 = sshll.u32 %s730_s25, 4  ;;  %s731_s0 = smov [#allocation7]   ;;  %s19_s26 = int_to_ptr.vmem [resolvable:$true] %s18_s26 }
   0x8   :  { %24 = dma.hbm_to_vmem [thread:$0]  %s17_s22, 1024, %s19_s26, [#allocation3], %s728_s23, %s728_s23, %s729_s24  }
   0x9   :  { %s46_s29 = sshll.u32 %s731_s0, 4  ;;  %s47_s29 = int_to_ptr.vmem [resolvable:$true] %s46_s29 }
   0xa   :  { %52 = dma.hbm_to_vmem [thread:$0]  %s45_s1, 1024, %s47_s29, [#allocation6], %s728_s23, %s728_s23, %s729_s24  }
   0xb   :  { %721 = dma.done.wait [#allocation3], 1024  }
   0xc   :  { %722 = vsyncadd [#allocation3], 4294966272 }
   0xd   :  { %723 = dma.done.wait [#allocation6], 2048  }
   0xe   :  { %724 = vsyncadd [#allocation6], 4294965248  ;;  %v546_v0 = vld [vmem:[#allocation5 + $0x38] sm:$0xff]  ;;  %v545_v1 = vld [vmem:[#allocation5 + $0x30] sm:$0xff]  ;;  %s421_s8 = sshll.u32 %s789_s4, 4  ;;  %s422_s8 = int_to_ptr.hbm [resolvable:$true] %s421_s8 }
   0xf   :  { %197 = vmatpush.bf16.msra.mxu0 %v546_v0  ;;  %602 = vmatpush.bf16.msra.mxu2 %v546_v0  ;;  %v544_v2 = vld [vmem:[#allocation5 + $0x28] sm:$0xff]  ;;  %v543_v3 = vld [vmem:[#allocation5 + $0x20] sm:$0xff]  ;;  %v542_v4 = vld [vmem:[#allocation5 + $0x18] sm:$0xff] }
  0x10   :  { %v541_v5 = vld [vmem:[#allocation5 + $0x10] sm:$0xff]  ;;  %v540_v6 = vld [vmem:[#allocation5 + $0x8] sm:$0xff]  ;;  %v539_v7 = vld [vmem:[#allocation5] sm:$0xff] }
  0x11   :  { %v531_v8 = vld [vmem:[#allocation2] sm:$0xff]  ;;  %v532_v10 = vld [vmem:[#allocation2 + $0x8] sm:$0xff]  ;;  %v554_v12 = vld [vmem:[#allocation7 + $0x38] sm:$0xff] }
  0x12   :  { %v535_v9 = vld [vmem:[#allocation2 + $0x20] sm:$0xff]  ;;  %v536_v11 = vld [vmem:[#allocation2 + $0x28] sm:$0xff]  ;;  %334 = vmatpush.bf16.msra.mxu1 %v554_v12  ;;  %v553_v13 = vld [vmem:[#allocation7 + $0x30] sm:$0xff]  ;;  %610 = vmatpush.bf16.msra.mxu3 %v554_v12 }
  0x13   :  { %198 = vmatpush.bf16.msra.mxu0 %v545_v1  ;;  %603 = vmatpush.bf16.msra.mxu2 %v545_v1  ;;  %v552_v14 = vld [vmem:[#allocation7 + $0x28] sm:$0xff]  ;;  %v551_v15 = vld [vmem:[#allocation7 + $0x20] sm:$0xff]  ;;  %v533_v16 = vld [vmem:[#allocation2 + $0x10] sm:$0xff] }
  0x14   :  { %v537_v17 = vld [vmem:[#allocation2 + $0x30] sm:$0xff]  ;;  %v534_v18 = vld [vmem:[#allocation2 + $0x18] sm:$0xff]  ;;  %v548_v22 = vld [vmem:[#allocation7 + $0x8] sm:$0xff] }
  0x15   :  { %v538_v19 = vld [vmem:[#allocation2 + $0x38] sm:$0xff]  ;;  %v549_v21 = vld [vmem:[#allocation7 + $0x10] sm:$0xff]  ;;  %v547_v23 = vld [vmem:[#allocation7] sm:$0xff] }
  0x16   :  { %335 = vmatpush.bf16.msra.mxu1 %v553_v13  ;;  %611 = vmatpush.bf16.msra.mxu3 %v553_v13  ;;  %v550_v20 = vld [vmem:[#allocation7 + $0x18] sm:$0xff]  ;;  %v624_v25 = vld [vmem:[%s787_s2] ss:$0 sm:$0xff]  ;;  %s732_s2 = smov [#allocation8]  }
  0x17   :  { %199 = vmatpush.bf16.msra.mxu0 %v544_v2  ;;  %604 = vmatpush.bf16.msra.mxu2 %v544_v2  ;;  %s419_s5 = sshll.u32 %s732_s2, 4  ;;  %s420_s5 = int_to_ptr.vmem [resolvable:$true] %s419_s5 }
  0x1a   :  { %336 = vmatpush.bf16.msra.mxu1 %v552_v14  ;;  %612 = vmatpush.bf16.msra.mxu3 %v552_v14 }
  0x1b   :  { %200 = vmatpush.bf16.msra.mxu0 %v543_v3  ;;  %605 = vmatpush.bf16.msra.mxu2 %v543_v3 }
  0x1e   :  { %337 = vmatpush.bf16.msra.mxu1 %v551_v15  ;;  %613 = vmatpush.bf16.msra.mxu3 %v551_v15 }
  0x1f   :  { %201 = vmatpush.bf16.msra.mxu0 %v542_v4  ;;  %606 = vmatpush.bf16.msra.mxu2 %v542_v4 }
  0x22   :  { %338 = vmatpush.bf16.msra.mxu1 %v550_v20  ;;  %614 = vmatpush.bf16.msra.mxu3 %v550_v20 }
  0x23   :  { %202 = vmatpush.bf16.msra.mxu0 %v541_v5  ;;  %607 = vmatpush.bf16.msra.mxu2 %v541_v5 }
  0x26   :  { %339 = vmatpush.bf16.msra.mxu1 %v549_v21  ;;  %615 = vmatpush.bf16.msra.mxu3 %v549_v21 }
  0x27   :  { %203 = vmatpush.bf16.msra.mxu0 %v540_v6  ;;  %608 = vmatpush.bf16.msra.mxu2 %v540_v6 }
  0x2a   :  { %340 = vmatpush.bf16.msra.mxu1 %v548_v22  ;;  %616 = vmatpush.bf16.msra.mxu3 %v548_v22 }
  0x2b   :  { %204 = vmatpush.bf16.msra.mxu0 %v539_v7  ;;  %609 = vmatpush.bf16.msra.mxu2 %v539_v7 }
  0x2e   :  { %205 = vmatmul.bf16.vlgmr.msra.gmra.mxu0 %v531_v8  ;;  %225 = vmatmul.bf16.vlgmr.msra.gmra.mxu2 %v535_v9 }
  0x2f   :  { %341 = vmatpush.bf16.msra.mxu1 %v547_v23  ;;  %617 = vmatpush.bf16.msra.mxu3 %v547_v23 }
  0x3e   :  { %210 = vmatmul.bf16.gmra.mxu0 %v532_v10  ;;  %230 = vmatmul.bf16.gmra.mxu2 %v536_v11 }
  0x4e   :  { %215 = vmatmul.bf16.gmra.mxu0 %v533_v16  ;;  %235 = vmatmul.bf16.gmra.mxu2 %v537_v17 }
  0x5e   :  { %220 = vmatmul.bf16.gmra.mxu0 %v534_v18  ;;  %240 = vmatmul.bf16.gmra.mxu2 %v538_v19 }
  0xab   :  { %v206_v24 = vpop.f32.mrf.mxu0 }
  0xac   :  { %v207_v26 = vadd.f32 %v624_v25, %v206_v24 }
  0xae   :  { %v246_v29 = vmax.f32 %v207_v26, 0.0 }
  0xb1   :  { %v226_v27 = vpop.f32.mrf.mxu2 }
  0xb2   :  { %v227_v32 = vadd.f32 %v624_v25, %v226_v27 }
  0xb3   :  { %v208_v28 = vpop.f32.mrf.mxu0 }
  0xb4   :  { %v209_v30 = vadd.f32 %v624_v25, %v208_v28  ;;  %v254_v37 = vmax.f32 %v227_v32, 0.0 }
  0xb6   :  { %v247_v31 = vmax.f32 %v209_v30, 0.0 }
  0xb8   :  { %v262_v33 = vpack.c.bf16 %v247_v31, %v246_v29 }
  0xb9   :  { %v228_v34 = vpop.f32.mrf.mxu2 }
  0xba   :  { %v229_v35 = vadd.f32 %v624_v25, %v228_v34  ;;  %342 = vmatmul.bf16.vlgmr.msra.gmra.mxu1 %v262_v33 }
  0xbb   :  { %v211_v36 = vpop.f32.mrf.mxu0 }
  0xbc   :  { %v255_v38 = vmax.f32 %v229_v35, 0.0  ;;  %v212_v40 = vadd.f32 %v624_v25, %v211_v36 }
  0xbe   :  { %v266_v39 = vpack.c.bf16 %v255_v38, %v254_v37  ;;  %v248_v43 = vmax.f32 %v212_v40, 0.0 }
  0xc0   :  { %362 = vmatmul.bf16.vlgmr.msra.gmra.mxu3 %v266_v39 }
  0xc1   :  { %v231_v41 = vpop.f32.mrf.mxu2 }
  0xc2   :  { %v232_v46 = vadd.f32 %v624_v25, %v231_v41 }
  0xc3   :  { %v213_v42 = vpop.f32.mrf.mxu0 }
  0xc4   :  { %v214_v44 = vadd.f32 %v624_v25, %v213_v42  ;;  %v256_v51 = vmax.f32 %v232_v46, 0.0 }
  0xc6   :  { %v249_v45 = vmax.f32 %v214_v44, 0.0 }
  0xc8   :  { %v263_v47 = vpack.c.bf16 %v249_v45, %v248_v43 }
  0xc9   :  { %v233_v48 = vpop.f32.mrf.mxu2 }
  0xca   :  { %v234_v49 = vadd.f32 %v624_v25, %v233_v48  ;;  %347 = vmatmul.bf16.gmra.mxu1 %v263_v47 }
  0xcb   :  { %v216_v50 = vpop.f32.mrf.mxu0 }
  0xcc   :  { %v257_v52 = vmax.f32 %v234_v49, 0.0  ;;  %v217_v54 = vadd.f32 %v624_v25, %v216_v50 }
  0xce   :  { %v267_v53 = vpack.c.bf16 %v257_v52, %v256_v51  ;;  %v250_v57 = vmax.f32 %v217_v54, 0.0 }
  0xd0   :  { %367 = vmatmul.bf16.gmra.mxu3 %v267_v53 }
  0xd1   :  { %v236_v55 = vpop.f32.mrf.mxu2 }
  0xd2   :  { %v237_v60 = vadd.f32 %v624_v25, %v236_v55 }
  0xd3   :  { %v218_v56 = vpop.f32.mrf.mxu0 }
  0xd4   :  { %v219_v58 = vadd.f32 %v624_v25, %v218_v56  ;;  %v258_v1 = vmax.f32 %v237_v60, 0.0 }
  0xd6   :  { %v251_v59 = vmax.f32 %v219_v58, 0.0 }
  0xd8   :  { %v264_v61 = vpack.c.bf16 %v251_v59, %v250_v57 }
  0xd9   :  { %v238_v62 = vpop.f32.mrf.mxu2 }
  0xda   :  { %v239_v63 = vadd.f32 %v624_v25, %v238_v62  ;;  %352 = vmatmul.bf16.gmra.mxu1 %v264_v61 }
  0xdb   :  { %v221_v0 = vpop.f32.mrf.mxu0 }
  0xdc   :  { %v259_v2 = vmax.f32 %v239_v63, 0.0  ;;  %v222_v4 = vadd.f32 %v624_v25, %v221_v0 }
  0xde   :  { %v268_v3 = vpack.c.bf16 %v259_v2, %v258_v1  ;;  %v252_v7 = vmax.f32 %v222_v4, 0.0 }
  0xe0   :  { %372 = vmatmul.bf16.gmra.mxu3 %v268_v3 }
  0xe1   :  { %v241_v5 = vpop.f32.mrf.mxu2 }
  0xe2   :  { %v242_v10 = vadd.f32 %v624_v25, %v241_v5 }
  0xe3   :  { %v223_v6 = vpop.f32.mrf.mxu0 }
  0xe4   :  { %v224_v8 = vadd.f32 %v624_v25, %v223_v6  ;;  %v260_v14 = vmax.f32 %v242_v10, 0.0 }
  0xe6   :  { %v253_v9 = vmax.f32 %v224_v8, 0.0 }
  0xe8   :  { %v265_v11 = vpack.c.bf16 %v253_v9, %v252_v7 }
  0xe9   :  { %v243_v12 = vpop.f32.mrf.mxu2 }
  0xea   :  { %v244_v13 = vadd.f32 %v624_v25, %v243_v12  ;;  %357 = vmatmul.bf16.gmra.mxu1 %v265_v11 }
  0xec   :  { %v261_v15 = vmax.f32 %v244_v13, 0.0 }
  0xee   :  { %v269_v16 = vpack.c.bf16 %v261_v15, %v260_v14 }
  0xf0   :  { %377 = vmatmul.bf16.gmra.mxu3 %v269_v16 }
 0x137   :  { %v343_v17 = vpop.f32.mrf.mxu1 }
 0x13f   :  { %v345_v18 = vpop.f32.mrf.mxu1 }
 0x140   :  { %v558_v19 = vpack.c.bf16 %v345_v18, %v343_v17 }
 0x142   :  { %559 = vst [vmem:[#allocation8] sm:$0xff] %v558_v19  }
 0x143   :  { %v363_v20 = vpop.f32.mrf.mxu3 }
 0x147   :  { %v348_v21 = vpop.f32.mrf.mxu1 }
 0x14b   :  { %v365_v22 = vpop.f32.mrf.mxu3 }
 0x14c   :  { %v578_v23 = vpack.c.bf16 %v365_v22, %v363_v20 }
 0x14e   :  { %598 = vst [vmem:[#allocation8 + $0x20] sm:$0xff] %v578_v23  }
 0x14f   :  { %v350_v24 = vpop.f32.mrf.mxu1 }
 0x150   :  { %v563_v26 = vpack.c.bf16 %v350_v24, %v348_v21 }
 0x152   :  { %595 = vst [vmem:[#allocation8 + $0x8] sm:$0xff] %v563_v26  }
 0x153   :  { %v368_v27 = vpop.f32.mrf.mxu3 }
 0x157   :  { %v353_v28 = vpop.f32.mrf.mxu1 }
 0x15b   :  { %v370_v25 = vpop.f32.mrf.mxu3 }
 0x15c   :  { %v583_v29 = vpack.c.bf16 %v370_v25, %v368_v27 }
 0x15e   :  { %599 = vst [vmem:[#allocation8 + $0x28] sm:$0xff] %v583_v29  }
 0x15f   :  { %v355_v30 = vpop.f32.mrf.mxu1 }
 0x160   :  { %v568_v31 = vpack.c.bf16 %v355_v30, %v353_v28 }
 0x162   :  { %596 = vst [vmem:[#allocation8 + $0x10] sm:$0xff] %v568_v31  }
 0x163   :  { %v373_v32 = vpop.f32.mrf.mxu3 }
 0x167   :  { %v358_v33 = vpop.f32.mrf.mxu1 }
 0x16b   :  { %v375_v34 = vpop.f32.mrf.mxu3 }
 0x16c   :  { %v588_v35 = vpack.c.bf16 %v375_v34, %v373_v32 }
 0x16e   :  { %600 = vst [vmem:[#allocation8 + $0x30] sm:$0xff] %v588_v35  }
 0x16f   :  { %v360_v36 = vpop.f32.mrf.mxu1 }
 0x170   :  { %v573_v37 = vpack.c.bf16 %v360_v36, %v358_v33 }
 0x172   :  { %597 = vst [vmem:[#allocation8 + $0x18] sm:$0xff] %v573_v37  }
 0x173   :  { %v378_v38 = vpop.f32.mrf.mxu3 }
 0x17b   :  { %v380_v39 = vpop.f32.mrf.mxu3 }
 0x17c   :  { %v593_v40 = vpack.c.bf16 %v380_v39, %v378_v38 }
 0x17e   :  { %601 = vst [vmem:[#allocation8 + $0x38] sm:$0xff] %v593_v40  }
 0x17f   :  { %427 = dma.vmem_to_hbm [thread:$0]  %s420_s5, 1024, %s422_s8, [#allocation4], %s728_s23, %s728_s23, %s729_s24  }
 0x180   :  { %725 = dma.done.wait [#allocation4], 1024  }
 0x181   :  { %726 = vsyncadd [#allocation4], 4294966272 }
 0x182   :  { %432 = vsyncpa [#allocation3], 1 }
 0x183   :  { %433 = vsyncpa [#allocation6], 1 }
 0x184   :  { %434 = vsyncpa [#allocation4], 1 }

</bundles_post_ra>
